<compile_context>
chip_gen: v7x
topology: tpu7x:2x2x1
jax: 0.10.0
libtpu: 0.0.40
codegen_flags: <defaults>
</compile_context>

<pallas_src>
import functools

import jax
import jax.numpy as jnp
from jax.experimental import pallas as pl
from jax.experimental.pallas import tpu as pltpu


def _conv_bn_relu_kernel(x_ref, w_ref, b_ref, o_ref, *, th, w_out, kh_size, kw_size):
    """One (batch, Cout-tile, row-tile) grid step.

    x_ref: (Hp, Wp, Cin)       padded NHWC image of the current batch element
    w_ref: (KH*KW*Cin, TCO)    BN-scale-folded, im2col-flattened weights
    b_ref: (1, TCO)            folded BN bias (f32)
    o_ref: (TH*W, TCO)         lane-dense output rows for this tile
    """
    cin = x_ref.shape[-1]
    h_idx = pl.program_id(2)
    row0 = pl.multiple_of(h_idx * th, th)

    # Halo block of input rows feeding this row tile: (TH + KH - 1, Wp, Cin).
    halo = x_ref[pl.ds(row0, th + kh_size - 1)]

    # im2col: concatenate the KH*KW shifted windows along the channel (lane)
    # axis so the whole conv becomes a single MXU matmul with K = KH*KW*Cin.
    patches = []
    for kh in range(kh_size):              # static unroll (KH, KW are small)
        rows = halo[kh:kh + th]                         # (TH, Wp, Cin)
        for kw in range(kw_size):
            patches.append(rows[:, kw:kw + w_out, :])   # (TH, W, Cin)
    slab = jnp.concatenate(patches, axis=-1) if len(patches) > 1 else patches[0]
    slab = slab.reshape(th * w_out, kh_size * kw_size * cin)

    acc = jnp.dot(slab, w_ref[...], preferred_element_type=jnp.float32)
    y = jnp.maximum(acc + b_ref[...], 0.0)              # folded BN bias + ReLU
    o_ref[...] = y.astype(o_ref.dtype)


def _pick_row_tile(h, w, max_rows):
    """Largest divisor TH of h with TH*w <= max_rows and a layout-legal output
    block (TH*w % 8 == 0 unless TH == h). Falls back to the full height."""
    for d in range(h, 0, -1):
        if h % d:
            continue
        if d * w > max_rows:
            continue
        if d != h and (d * w) % 8 != 0:
            continue
        return d
    return h


def conv_bn_relu(x_nchw, weight_oihw, gamma, beta, running_mean, running_var,
                 *, eps=1e-5, compute_dtype=jnp.bfloat16, max_tile_rows=1024):
    """Forward of Conv(c1, c2, k) with stride=1, dilation=1, groups=1, act=ReLU."""
    N, Cin, H, W = x_nchw.shape
    Cout, Cin_w, KH, KW = weight_oihw.shape
    assert Cin == Cin_w, "groups != 1 not supported"
    assert KH == KW and KH % 2 == 1, "auto_padding path needs a square, odd kernel"
    pad = KH // 2

    f32 = jnp.float32
    # ---- fold BatchNorm (eval) into the conv weights / a per-channel bias ----
    scale = gamma.astype(f32) / jnp.sqrt(running_var.astype(f32) + eps)   # (Cout,)
    bias = beta.astype(f32) - running_mean.astype(f32) * scale            # (Cout,)
    w_hwio = jnp.transpose(weight_oihw, (2, 3, 1, 0)).astype(f32)         # OIHW->HWIO
    w_hwio = w_hwio * scale[None, None, None, :]

    # ---- lane-dense output channels: pad Cout up to a multiple of 128 ----
    LANE = 128
    Cout_p = ((Cout + LANE - 1) // LANE) * LANE
    if Cout_p != Cout:
        w_hwio = jnp.pad(w_hwio, ((0, 0), (0, 0), (0, 0), (0, Cout_p - Cout)))
        bias = jnp.pad(bias, (0, Cout_p - Cout))
    w_mat = w_hwio.reshape(KH * KW * Cin, Cout_p).astype(compute_dtype)
    bias2d = bias.reshape(1, Cout_p)

    # ---- layout glue: NCHW -> NHWC + zero halo padding, cast to bf16 ----
    x_nhwc = jnp.transpose(x_nchw, (0, 2, 3, 1)).astype(compute_dtype)
    x_pad = jnp.pad(x_nhwc, ((0, 0), (pad, pad), (pad, pad), (0, 0)))
    Hp, Wp = H + 2 * pad, W + 2 * pad

    # ---- tile sizes ----
    TCO = 256 if Cout_p % 256 == 0 else 128        # lane-dense Cout tile
    TH = _pick_row_tile(H, W, max_tile_rows)       # bounds acc / output block
    n_h = H // TH
    n_co = Cout_p // TCO

    kernel = functools.partial(_conv_bn_relu_kernel,
                               th=TH, w_out=W, kh_size=KH, kw_size=KW)

    out = pl.pallas_call(
        kernel,
        out_shape=jax.ShapeDtypeStruct((N, H * W, Cout_p), f32),
        grid_spec=pltpu.PrefetchScalarGridSpec(
            num_scalar_prefetch=0,
            # row-tiles fastest: weights/bias (index co) and the input image
            # (index n) stay resident in VMEM across the inner steps.
            grid=(N, n_co, n_h),
            in_specs=[
                pl.BlockSpec((None, Hp, Wp, Cin), lambda n, co, h: (n, 0, 0, 0)),
                pl.BlockSpec((KH * KW * Cin, TCO), lambda n, co, h: (0, co)),
                pl.BlockSpec((1, TCO), lambda n, co, h: (0, co)),
            ],
            out_specs=pl.BlockSpec((None, TH * W, TCO), lambda n, co, h: (n, h, co)),
        ),
        compiler_params=pltpu.CompilerParams(
            dimension_semantics=("parallel", "parallel", "parallel"),
            vmem_limit_bytes=32 * 1024 * 1024,
        ),
    )(x_pad, w_mat, bias2d)

    out = out.reshape(N, H, W, Cout_p)[..., :Cout]            # drop Cout padding
    return jnp.transpose(out, (0, 3, 1, 2)).astype(x_nchw.dtype)   # NHWC -> NCHW


# ----------------------------- references -----------------------------------

def _reference_f32(x, w, gamma, beta, mean, var, eps=1e-5):
    pad = w.shape[2] // 2
    y = jax.lax.conv_general_dilated(
        x.astype(jnp.float32), w.astype(jnp.float32),
        window_strides=(1, 1), padding=((pad, pad), (pad, pad)),
        dimension_numbers=("NCHW", "OIHW", "NCHW"))
    scale = gamma / jnp.sqrt(var + eps)
    bias = beta - mean * scale
    return jnp.maximum(y * scale[None, :, None, None] + bias[None, :, None, None], 0.0)


def _reference_bf16(x, w, gamma, beta, mean, var, eps=1e-5):
    # Mirrors the kernel numerics: BN scale folded into the weights in f32,
    # bf16 operands, f32 accumulation, bias + ReLU in f32.
    pad = w.shape[2] // 2
    scale = gamma / jnp.sqrt(var + eps)
    bias = beta - mean * scale
    wf = (w.astype(jnp.float32) * scale[:, None, None, None]).astype(jnp.bfloat16)
    y = jax.lax.conv_general_dilated(
        x.astype(jnp.bfloat16), wf,
        window_strides=(1, 1), padding=((pad, pad), (pad, pad)),
        dimension_numbers=("NCHW", "OIHW", "NCHW"),
        preferred_element_type=jnp.float32)
    return jnp.maximum(y + bias[None, :, None, None], 0.0)


if __name__ == "__main__":
    key = jax.random.PRNGKey(0)

    def run_case(case_id, c1, c2, k, h, w, n=2, max_tile_rows=1024):
        ks = jax.random.split(jax.random.fold_in(key, case_id), 6)
        x = jax.random.normal(ks[0], (n, c1, h, w), dtype=jnp.float32)
        weight = jax.random.normal(ks[1], (c2, c1, k, k), dtype=jnp.float32) * 0.1
        gamma = jax.random.normal(ks[2], (c2,), dtype=jnp.float32) * 0.5 + 1.0
        beta = jax.random.normal(ks[3], (c2,), dtype=jnp.float32) * 0.1
        mean = jax.random.normal(ks[4], (c2,), dtype=jnp.float32) * 0.1
        var = jnp.abs(jax.random.normal(ks[5], (c2,), dtype=jnp.float32)) + 0.5

        out = conv_bn_relu(x, weight, gamma, beta, mean, var,
                           max_tile_rows=max_tile_rows)
        out = jax.block_until_ready(out)
        assert out.shape == (n, c2, h, w), f"bad output shape {out.shape}"

        ref_mirror = _reference_bf16(x, weight, gamma, beta, mean, var)
        assert jnp.allclose(out, ref_mirror, rtol=1e-2, atol=1e-2), \
            f"case {case_id}: mismatch vs bf16-mirrored reference"

        ref_f32 = _reference_f32(x, weight, gamma, beta, mean, var)
        max_err = float(jnp.max(jnp.abs(out - ref_f32)))
        assert max_err < 0.25, f"case {case_id}: too far from f32 reference ({max_err})"

    # Conv(c1=4, c2=8, kernel_size=3): pad=1; max_tile_rows=128 forces TH=8,
    # so the multi-row-tile (halo) path is exercised.
    run_case(0, c1=4, c2=8, k=3, h=16, w=16, n=2, max_tile_rows=128)
    # Conv(c1=4, c2=8, kernel_size=1): module default kernel_size, pad=0,
    # single row tile.
    run_case(1, c1=4, c2=8, k=1, h=16, w=16, n=2)

    print("KERNEL_OK")
</pallas_src>

<mosaic_0001>
module attributes {stable_mosaic.version = 11 : i64} {
  func.func @_conv_bn_relu_kernel(%arg0: i32, %arg1: i32, %arg2: i32, %arg3: memref<1x18x18x4xbf16, #tpu.memory_space<vmem>>, %arg4: memref<36x128xbf16, #tpu.memory_space<vmem>>, %arg5: memref<1x128xf32, #tpu.memory_space<vmem>>, %arg6: memref<1x128x128xf32, #tpu.memory_space<vmem>>) attributes {dimension_semantics = [#tpu.dimension_semantics<parallel>, #tpu.dimension_semantics<parallel>, #tpu.dimension_semantics<parallel>], iteration_bounds = array<i64: 2, 1, 2>, scalar_prefetch = 0 : i64, scratch_operands = 0 : i64, tpu.core_type = #tpu.core_type<tc>, window_params = [{transform_indices = @transform_0, window_bounds = array<i64: 1, 18, 18, 4>}, {transform_indices = @transform_1, window_bounds = array<i64: 36, 128>}, {transform_indices = @transform_2, window_bounds = array<i64: 1, 128>}, {transform_indices = @transform_3, window_bounds = array<i64: 1, 128, 128>}]} {
    %c8_i32 = arith.constant 8 : i32
    %0 = arith.muli %arg2, %c8_i32 : i32
    %1 = tpu.assume_multiple %0, 8 : i32
    %c0 = arith.constant 0 : index
    %2 = arith.index_cast %1 : i32 to index
    %c0_0 = arith.constant 0 : index
    %c0_1 = arith.constant 0 : index
    %3 = vector.load %arg3[%c0, %2, %c0_0, %c0_1] : memref<1x18x18x4xbf16, #tpu.memory_space<vmem>>, vector<1x10x18x4xbf16>
    %4 = vector.shape_cast %3 : vector<1x10x18x4xbf16> to vector<10x18x4xbf16>
    %5 = vector.extract_strided_slice %4 {offsets = [0, 0, 0], sizes = [8, 18, 4], strides = [1, 1, 1]} : vector<10x18x4xbf16> to vector<8x18x4xbf16>
    %6 = vector.extract_strided_slice %5 {offsets = [0, 0, 0], sizes = [8, 16, 4], strides = [1, 1, 1]} : vector<8x18x4xbf16> to vector<8x16x4xbf16>
    %7 = vector.extract_strided_slice %5 {offsets = [0, 1, 0], sizes = [8, 16, 4], strides = [1, 1, 1]} : vector<8x18x4xbf16> to vector<8x16x4xbf16>
    %8 = vector.extract_strided_slice %5 {offsets = [0, 2, 0], sizes = [8, 16, 4], strides = [1, 1, 1]} : vector<8x18x4xbf16> to vector<8x16x4xbf16>
    %9 = vector.extract_strided_slice %4 {offsets = [1, 0, 0], sizes = [8, 18, 4], strides = [1, 1, 1]} : vector<10x18x4xbf16> to vector<8x18x4xbf16>
    %10 = vector.extract_strided_slice %9 {offsets = [0, 0, 0], sizes = [8, 16, 4], strides = [1, 1, 1]} : vector<8x18x4xbf16> to vector<8x16x4xbf16>
    %11 = vector.extract_strided_slice %9 {offsets = [0, 1, 0], sizes = [8, 16, 4], strides = [1, 1, 1]} : vector<8x18x4xbf16> to vector<8x16x4xbf16>
    %12 = vector.extract_strided_slice %9 {offsets = [0, 2, 0], sizes = [8, 16, 4], strides = [1, 1, 1]} : vector<8x18x4xbf16> to vector<8x16x4xbf16>
    %13 = vector.extract_strided_slice %4 {offsets = [2, 0, 0], sizes = [8, 18, 4], strides = [1, 1, 1]} : vector<10x18x4xbf16> to vector<8x18x4xbf16>
    %14 = vector.extract_strided_slice %13 {offsets = [0, 0, 0], sizes = [8, 16, 4], strides = [1, 1, 1]} : vector<8x18x4xbf16> to vector<8x16x4xbf16>
    %15 = vector.extract_strided_slice %13 {offsets = [0, 1, 0], sizes = [8, 16, 4], strides = [1, 1, 1]} : vector<8x18x4xbf16> to vector<8x16x4xbf16>
    %16 = vector.extract_strided_slice %13 {offsets = [0, 2, 0], sizes = [8, 16, 4], strides = [1, 1, 1]} : vector<8x18x4xbf16> to vector<8x16x4xbf16>
    %17 = tpu.concatenate %6, %7, %8, %10, %11, %12, %14, %15, %16 in 2 : vector<8x16x4xbf16>, vector<8x16x4xbf16>, vector<8x16x4xbf16>, vector<8x16x4xbf16>, vector<8x16x4xbf16>, vector<8x16x4xbf16>, vector<8x16x4xbf16>, vector<8x16x4xbf16>, vector<8x16x4xbf16> -> vector<8x16x36xbf16>
    %18 = vector.shape_cast %17 : vector<8x16x36xbf16> to vector<128x36xbf16>
    %c0_2 = arith.constant 0 : index
    %c0_3 = arith.constant 0 : index
    %19 = vector.load %arg4[%c0_2, %c0_3] : memref<36x128xbf16, #tpu.memory_space<vmem>>, vector<36x128xbf16>
    %cst = arith.constant dense<0.000000e+00> : vector<128x128xf32>
    %20 = tpu.matmul %18, %19, %cst {dimension_numbers = #tpu.dot_dimension_numbers<[1], [0], [0], [1], [0, 0, 1, 1], [], []>} : vector<128x36xbf16>, vector<36x128xbf16>, vector<128x128xf32> -> vector<128x128xf32>
    %c0_4 = arith.constant 0 : index
    %c0_5 = arith.constant 0 : index
    %21 = vector.load %arg5[%c0_4, %c0_5] : memref<1x128xf32, #tpu.memory_space<vmem>>, vector<1x128xf32>
    %22 = vector.broadcast %21 : vector<1x128xf32> to vector<128x128xf32>
    %23 = arith.addf %20, %22 : vector<128x128xf32>
    %cst_6 = arith.constant 0.000000e+00 : f32
    %24 = vector.broadcast %cst_6 : f32 to vector<128x128xf32>
    %25 = arith.maximumf %23, %24 : vector<128x128xf32>
    %c0_7 = arith.constant 0 : index
    %c0_8 = arith.constant 0 : index
    %c0_9 = arith.constant 0 : index
    %26 = vector.load %arg6[%c0_7, %c0_8, %c0_9] : memref<1x128x128xf32, #tpu.memory_space<vmem>>, vector<1x128x128xf32>
    %27 = vector.shape_cast %26 : vector<1x128x128xf32> to vector<128x128xf32>
    %28 = vector.shape_cast %25 : vector<128x128xf32> to vector<1x128x128xf32>
    tpu.vector_store %arg6[%c0_7, %c0_8, %c0_9], %28 {strides = array<i32>} : memref<1x128x128xf32, #tpu.memory_space<vmem>>, vector<1x128x128xf32>,
    return
  }
  func.func @transform_0(%arg0: i32, %arg1: i32, %arg2: i32) -> (i32, i32, i32, i32) {
    %c0_i32 = arith.constant 0 : i32
    %c0_i32_0 = arith.constant 0 : i32
    %c0_i32_1 = arith.constant 0 : i32
    %c0_i32_2 = arith.constant 0 : i32
    return %arg0, %c0_i32, %c0_i32_0, %c0_i32_1 : i32, i32, i32, i32
  }
  func.func @transform_1(%arg0: i32, %arg1: i32, %arg2: i32) -> (i32, i32) {
    %c0_i32 = arith.constant 0 : i32
    %c0_i32_0 = arith.constant 0 : i32
    return %c0_i32, %arg1 : i32, i32
  }
  func.func @transform_2(%arg0: i32, %arg1: i32, %arg2: i32) -> (i32, i32) {
    %c0_i32 = arith.constant 0 : i32
    %c0_i32_0 = arith.constant 0 : i32
    return %c0_i32, %arg1 : i32, i32
  }
  func.func @transform_3(%arg0: i32, %arg1: i32, %arg2: i32) -> (i32, i32, i32) {
    %c0_i32 = arith.constant 0 : i32
    return %arg0, %arg2, %arg1 : i32, i32, i32
  }
}

</mosaic_0001>

<bundles_post_ra>
// kernel: tpu_custom_call.1
= control target key start
LH: loop header
LB: loop body
LE: loop exit
PB: predicated region body
PF: predicated region fallthrough
CT: control target
= control target key end

     0   :  { %8 = vsyncpa [#allocation3], 0  ;;  %s1860_s0 = inlined_call_operand.vmem [shape: bf16[2,18,18,4], index: 0, kind: input, shape index: {}]   ;;  %s1861_s1 = inlined_call_operand.vmem [shape: bf16[36,128], index: 1, kind: input, shape index: {}]   ;;  %s1862_s2 = inlined_call_operand.vmem [shape: f32[1,128], index: 2, kind: input, shape index: {}]   ;;  %s1863_s3 = inlined_call_operand.hbm [shape: f32[2,256,128], index: 3, kind: output, shape index: {}]  }
   0x1   :  { %10 = vsyncpa [#allocation3 + $0x1], 0  ;;  %s1380_s12 = smov 0   ;;  %s1382_s13 = smov 0  }
   0x2   :  { %s1384_s14 = smov 0   ;;  %s1386_s15 = smov 0  }
   0x3   :  { %s1388_s16 = smov 0   ;;  %s1390_s17 = smov 0  }
   0x4   :  { %s1392_s18 = smov 0   ;;  %s1394_s19 = smov 0  }
   0x5 LB: > { %s1058_s20 = sadd.s32 4294967295, %s1348_s19   ;;  %s1059_s21 = sadd.s32 4294967294, %s1348_s19   ;;  %s1348_s19 = sphi %s1394_s19, %s16_s19   ;;  %s1344_s18 = sphi %s1392_s18, %s1872_s18   ;;  %s1340_s17 = sphi %s1390_s17, %s1871_s17   ;;  %s1336_s16 = sphi %s1388_s16, %s1870_s16   ;;  %s1332_s15 = sphi %s1386_s15, %s1869_s15   ;;  %s1328_s14 = sphi %s1384_s14, %s1868_s14   ;;  %s1324_s13 = sphi %s1382_s13, %s1867_s13   ;;  %s1320_s12 = sphi %s1380_s12, %s1866_s12  }
   0x6   : > { %s28_s22 = sadd.s32 1, %s1340_s17  ;;  %s35_s23 = sadd.s32 1, %s1344_s18 }
   0x7   : > { %p29_p0 = scmp.ge.s32.totalorder %s28_s22, 2  ;;  %p134_p1 = scmp.ne.s32.totalorder %s1328_s14, %s1324_s13 }
   0x8   : > { %p135_p2 = scmp.eq.s32.totalorder %s1058_s20, 3  ;;  %p140_p5 = scmp.ne.s32.totalorder %s1324_s13, %s1320_s12 }
   0x9   : > { %s1874_s22 = smov (%p29_p0, %s28_s22), 0  ;;  %s1876_s23 = smov (!%p29_p0, %s35_s23), %s1344_s18 }
   0xa   : > { %s118_s24 = ssub.s32 %s1340_s17, %s1874_s22  ;;  %p1431_p3 = por %p135_p2, %p134_p1 }
   0xb   : > { %p37_p4 = scmp.ge.s32.totalorder %s1876_s23, 2  ;;  %p141_p6 = scmp.eq.s32.totalorder %s1059_s21, 3 }
   0xc   : > { %p1064_p7 = scmp.ge.s32.totalorder %s1348_s19, 1  ;;  %p180_p9 = scmp.lt.s32.totalorder %s1348_s19, 5 }
   0xd   : > { %s1878_s23 = smov (%p37_p4, %s1876_s23), 0  ;;  %p1440_p8 = por %p141_p6, %p140_p5 }
   0xe   : > { %s117_s27 = ssub.s32 %s1344_s18, %s1878_s23  ;;  %s124_s28 = sadd.s32 1, %s1328_s14 }
   0xf   : > { %s119_s29 = sor.u32 %s118_s24, %s117_s27  ;;  %p181_p10 = pnand %p1064_p7, %p180_p9 }
  0x10   : > { %p122_p11 = scmp.eq.s32.totalorder %s119_s29, 0  ;;  %p211_p12 = scmp.lt.s32.totalorder (!%p181_p10), %s1336_s16, 1  ;;  %vm436_vm0 = vcmask (!%p181_p10), 1046528   ;;  %vm323_vm1 = vsmask.f32 (!%p181_p10), 7424  ;;  %vm799_vm2 = vcmask (!%p181_p10), 1041408  }
  0x11   : > { %184 = sbr.rel (%p181_p10) target bundleno = 506 (0x1fa), region = 32  ;;  %s1350_s11 = smov (!%p181_p10), 12   ;;  %vm619_vm3 = vcmask (!%p181_p10), 31744   ;;  %vm636_vm4 = vcmask (!%p181_p10), 64512   ;;  %vm670_vm5 = vcmask (!%p181_p10), 130048   ;;  %vm653_vm6 = vcmask (!%p181_p10), 97280  }
  0x12   : > { %s1449_s30 = scalar_select %p122_p11, %s1328_s14, %s124_s28  }
  0x13   : > { %s1108_s5 = smul.u32 (!%p181_p10), 96, %s1332_s15  ;;  %s1351_s20 = smov (!%p181_p10), 8   ;;  %vm687_vm7 = vcmask (!%p181_p10), 162816   ;;  %vm704_vm8 = vcmask (!%p181_p10), 195584   ;;  %vm721_vm9 = vcmask (!%p181_p10), 228352   ;;  %vm738_vm10 = vcmask (!%p181_p10), 261120  }
  0x14   : > { %s1352_s21 = smov (!%p181_p10), 4   ;;  %s1353_s24 = smov (!%p181_p10), 16   ;;  %vm782_vm11 = vcmask (!%p181_p10), 293888  }
  0x15   : > { %s1354_s27 = smov (!%p181_p10), 20   ;;  %s1355_s28 = smov (!%p181_p10), 24  }
  0x16   : > { %s1356_s7 = smov (!%p181_p10), 28   ;;  %s1103_s29 = sshll.u32 (!%p181_p10), %s1332_s15, 4 }
  0x18   : > { %s212_s4 = scalar_select %p211_p12, %s1336_s16, 1 }
  0x1a   : > { %s1150_s6 = smul.u32 216, %s212_s4  ;;  %s1104_s4 = sshll.u32 %s1336_s16, 5 }
  0x1c   : > { %s215_s9 = scalar_lea.vmem %s1860_s0, %s1150_s6 }
  0x1d   : > { %s1457_s10 = scalar_lea.vmem %s215_s9, %s1108_s5  ;;  %s946_s5 = sadd.s32 %s1104_s4, %s1103_s29 }
  0x1e   : > { %v1460_v0 = vld [vmem:[%s1457_s10 + $0x3c] sm:$0xff]   ;;  %v1463_v1 = vld [vmem:[%s1457_s10 + $0xc] sm:$0xff]   ;;  %v1234_v3 = vld [vmem:[%s1457_s10 + $0x38] ss:$0 sps:$4 sm:$0x11]   ;;  %s1105_s15 = sshll.u32 %s946_s5, 7 }
  0x1f   : > { %490 = vrot.lane.b32.xlu1 %v1460_v0, %s1350_s11  ;;  %482 = vrot.lane.b32.xlu0 %v1463_v1, %s1350_s11  ;;  %v1470_v2 = vld [vmem:[%s1457_s10 + $0x30] sm:$0xff]   ;;  %v1474_v4 = vld [vmem:[%s1457_s10] sm:$0xff]   ;;  %v452_v5 = vrot.slane %v1460_v0, 1  ;;  %v450_v7 = vrot.slane %v1234_v3, 1  ;;  %v440_v9 = vrot.slane %v1463_v1, 1  ;;  %v337_v16 = vshrl.u32 %v1463_v1, 16  ;;  %s1797_s8 = scalar_lea.hbm %s1863_s3, %s1105_s15 }
  0x20   : > { %v449_v6 = vrot.slane %v1470_v2, 1  ;;  %v1236_v8 = vld [vmem:[%s1457_s10 + $0x8] ss:$0 sps:$4 sm:$0x11]   ;;  %v437_v10 = vrot.slane %v1474_v4, 1  ;;  %v339_v17 = vshll.u32 %v1463_v1, 16 }
  0x21   : > { %v1237_v11 = vld [vmem:[%s1457_s10 + $0x44] ss:$0 sps:$4 sm:$0x11]   ;;  %v438_v13 = vrot.slane %v1236_v8, 1  ;;  %v325_v18 = vshrl.u32 %v1474_v4, 16  ;;  %v327_v22 = vshll.u32 %v1474_v4, 16 }
  0x22   : > { %v1483_v12 = vsel %vm436_vm0, %v449_v6, %v450_v7  ;;  %v1238_v14 = vld [vmem:[%s1457_s10 + $0x14] ss:$0 sps:$4 sm:$0x11]   ;;  %v453_v15 = vrot.slane %v1237_v11, 1  ;;  %v341_v24 = vrot.slane %v339_v17, 1  ;;  %v332_v25 = vshll.u32 %v1236_v8, 16 }
  0x23   : > { %469 = vrot.lane.b32.xlu1 %v1483_v12, %s1351_s20  ;;  %v439_v19 = vsel %vm436_vm0, %v437_v10, %v438_v13  ;;  %v441_v20 = vrot.slane %v1238_v14, 1  ;;  %v344_v21 = vshll.u32 %v1238_v14, 16  ;;  %v385_v26 = vshrl.u32 %v1460_v0, 16  ;;  %v1507_v39 = vld [vmem:[%s1457_s10 + $0x48] sm:$0xff]   ;;  %v1514_v46 = vld [vmem:[%s1457_s10 + $0x18] sm:$0xff]   ;;  %v1532_v57 = vld [vmem:[%s1457_s10 + $0x60] sm:$0xff]  }
  0x24   : > { %461 = vrot.lane.b32.xlu0 %v439_v19, %s1351_s20  ;;  %v1495_v23 = vsel %vm436_vm0, %v452_v5, %v453_v15  ;;  %v329_v29 = vrot.slane %v327_v22, 1  ;;  %v387_v30 = vshll.u32 %v1460_v0, 16  ;;  %v342_v31 = vor.u32 %v341_v24, %v337_v16  ;;  %v1241_v47 = vld [vmem:[%s1457_s10 + $0x50] ss:$0 sps:$4 sm:$0x11]  }
  0x25   : > { %v1499_v27 = vsel %vm436_vm0, %v440_v9, %v441_v20  ;;  %v346_v28 = vrot.slane %v344_v21, 1  ;;  %v334_v32 = vrot.slane %v332_v25, 1  ;;  %v392_v33 = vshll.u32 %v1237_v11, 16  ;;  %v1242_v51 = vld [vmem:[%s1457_s10 + $0x20] ss:$0 sps:$4 sm:$0x11]  }
  0x26   : > { %v373_v34 = vshrl.u32 %v1470_v2, 16  ;;  %v330_v35 = vor.u32 %v329_v29, %v325_v18  ;;  %v389_v36 = vrot.slane %v387_v30, 1  ;;  %v375_v37 = vshll.u32 %v1470_v2, 16  ;;  %v1540_v61 = vld [vmem:[%s1457_s10 + $0x6c] sm:$0xff]  }
  0x27   : > { %471 = vrot.lane.b32.xlu1 %v1495_v23, %s1351_s20  ;;  %v380_v38 = vshll.u32 %v1234_v3, 16  ;;  %v347_v40 = vsel %vm323_vm1, %v342_v31, %v346_v28  ;;  %v394_v41 = vrot.slane %v392_v33, 1  ;;  %v399_v50 = vshll.u32 %v1507_v39, 16  ;;  %v1248_v3 = vld [vmem:[%s1457_s10 + $0x68] ss:$0 sps:$4 sm:$0x11]  }
  0x28   : > { %463 = vrot.lane.b32.xlu0 %v1499_v27, %s1351_s20  ;;  %v335_v42 = vsel %vm323_vm1, %v330_v35, %v334_v32  ;;  %v390_v43 = vor.u32 %v389_v36, %v385_v26  ;;  %v377_v44 = vrot.slane %v375_v37, 1  ;;  %v351_v53 = vshll.u32 %v1514_v46, 16  ;;  %v1250_v15 = vld [vmem:[%s1457_s10 + $0x74] ss:$0 sps:$4 sm:$0x11]  }
  0x29   : > { %v382_v45 = vrot.slane %v380_v38, 1  ;;  %v397_v54 = vshrl.u32 %v1507_v39, 16  ;;  %v401_v55 = vrot.slane %v399_v50, 1  ;;  %v404_v56 = vshll.u32 %v1241_v47, 16  ;;  %v1585_v38 = vld [vmem:[%s1457_s10 + $0x54] sm:$0xff]  }
  0x2a   : > { %v1519_v48 = vsel %vm323_vm1, %v390_v43, %v394_v41  ;;  %v378_v49 = vor.u32 %v377_v44, %v373_v34  ;;  %v356_v58 = vshll.u32 %v1242_v51, 16  ;;  %v349_v59 = vshrl.u32 %v1514_v46, 16  ;;  %v1591_v41 = vld [vmem:[%s1457_s10 + $0x24] sm:$0xff]   ;;  %v1246_v44 = vld [vmem:[%s1457_s10 + $0x2c] ss:$0 sps:$4 sm:$0x11]  }
  0x2b   : > { %422 = vrot.lane.b32.xlu1 %v347_v40, %s1352_s21  ;;  %v353_v60 = vrot.slane %v351_v53, 1  ;;  %v402_v62 = vor.u32 %v401_v55, %v397_v54  ;;  %v406_v63 = vrot.slane %v404_v56, 1  ;;  %v502_v5 = vshrl.u32 %v1532_v57, 16  ;;  %v1252_v55 = vld [vmem:[%s1861_s1 + $0x8] sm:$0xff]  }
  0x2c   : > { %420 = vrot.lane.b32.xlu0 %v335_v42, %s1352_s21  ;;  %v1525_v52 = vsel %vm323_vm1, %v378_v49, %v382_v45  ;;  %v504_v6 = vshll.u32 %v1532_v57, 16  ;;  %v358_v7 = vrot.slane %v356_v58, 1  ;;  %v529_v8 = vrot.slane %v1532_v57, 1  ;;  %v1245_v42 = vld [vmem:[%s1457_s10 + $0x5c] ss:$0 sps:$4 sm:$0x11]  }
  0x2d   : > { %v354_v9 = vor.u32 %v353_v60, %v349_v59  ;;  %v509_v11 = vshll.u32 %v1248_v3, 16  ;;  %v573_v13 = vshrl.u32 %v1540_v61, 16  ;;  %v530_v14 = vrot.slane %v1248_v3, 1  ;;  %s1357_s10 = smov 32  }
  0x2e   : > { %v506_v10 = vrot.slane %v504_v6, 1  ;;  %v575_v16 = vshll.u32 %v1540_v61, 16  ;;  %v600_v17 = vrot.slane %v1540_v61, 1  ;;  %v1555_v18 = vsel %vm323_vm1, %v402_v62, %v406_v63  ;;  %v1253_v62 = vld [vmem:[%s1861_s1 + $0x10] ss:$0 sps:$4 sm:$0x33]  }
  0x2f   : > { %430 = vrot.lane.b32.xlu1 %v1519_v48, %s1352_s21  ;;  %v511_v20 = vrot.slane %v509_v11, 1  ;;  %v1559_v21 = vsel %vm436_vm0, %v529_v8, %v530_v14  ;;  %v580_v24 = vshll.u32 %v1250_v15, 16  ;;  %v601_v25 = vrot.slane %v1250_v15, 1 }
  0x30   : > { %428 = vrot.lane.b32.xlu0 %v1525_v52, %s1352_s21  ;;  %v507_v19 = vor.u32 %v506_v10, %v502_v5  ;;  %v577_v22 = vrot.slane %v575_v16, 1  ;;  %v1562_v26 = vsel %vm323_vm1, %v354_v9, %v358_v7  ;;  %v455_v32 = vrot.slane %v1507_v39, 1 }
  0x31   : > { %v582_v30 = vrot.slane %v580_v24, 1  ;;  %v1570_v31 = vsel %vm436_vm0, %v600_v17, %v601_v25  ;;  %v456_v33 = vrot.slane %v1241_v47, 1  ;;  %v443_v35 = vrot.slane %v1514_v46, 1 }
  0x32   : > { %v1565_v28 = vsel %vm323_vm1, %v507_v19, %v511_v20  ;;  %v578_v29 = vor.u32 %v577_v22, %v573_v13  ;;  %v444_v36 = vrot.slane %v1242_v51, 1  ;;  %v411_v43 = vshll.u32 %v1585_v38, 16 }
  0x33   : > { %492 = vrot.lane.b32.xlu1 %v1507_v39, %s1350_s11  ;;  %v1582_v37 = vsel %vm436_vm0, %v455_v32, %v456_v33  ;;  %v363_v45 = vshll.u32 %v1591_v41, 16  ;;  %v409_v47 = vshrl.u32 %v1585_v38, 16  ;;  %v416_v50 = vshll.u32 %v1245_v42, 16 }
  0x34   : > { %484 = vrot.lane.b32.xlu0 %v1514_v46, %s1350_s11  ;;  %v1576_v34 = vsel %vm323_vm1, %v578_v29, %v582_v30  ;;  %v413_v49 = vrot.slane %v411_v43, 1  ;;  %v361_v51 = vshrl.u32 %v1591_v41, 16  ;;  %v368_v54 = vshll.u32 %v1246_v44, 16 }
  0x35   : > { %v365_v53 = vrot.slane %v363_v45, 1  ;;  %v418_v58 = vrot.slane %v416_v50, 1  ;;  %v801_v3 = vsel %vm799_vm2, %v1253_v62, 0  ;;  %v458_v6 = vrot.slane %v1585_v38, 1 }
  0x36   : > { %v414_v56 = vor.u32 %v413_v49, %v409_v47  ;;  %v370_v60 = vrot.slane %v368_v54, 1  ;;  %v459_v7 = vrot.slane %v1245_v42, 1  ;;  %v446_v8 = vrot.slane %v1591_v41, 1 }
  0x37   : > { %521 = vrot.lane.b32.xlu1 %v1519_v48, %s1353_s24  ;;  %v366_v59 = vor.u32 %v365_v53, %v361_v51  ;;  %v447_v9 = vrot.slane %v1246_v44, 1 }
  0x38   : > { %513 = vrot.lane.b32.xlu0 %v347_v40, %s1353_s24  ;;  %v445_v40 = vsel %vm436_vm0, %v443_v35, %v444_v36  ;;  %v419_v63 = vsel %vm323_vm1, %v414_v56, %v418_v58  ;;  %v460_v10 = vsel %vm436_vm0, %v458_v6, %v459_v7 }
  0x39   : > { %v371_v5 = vsel %vm323_vm1, %v366_v59, %v370_v60  ;;  %v448_v11 = vsel %vm436_vm0, %v446_v8, %v447_v9 }
  0x3b   : > { %523 = vrot.lane.b32.xlu1 %v1555_v18, %s1353_s24 }
  0x3c   : > { %515 = vrot.lane.b32.xlu0 %v1562_v26, %s1353_s24 }
  0x3f   : > { %540 = vrot.lane.b32.xlu1 %v1495_v23, %s1354_s27 }
  0x40   : > { %532 = vrot.lane.b32.xlu0 %v1499_v27, %s1354_s27  ;;  %v1251_v27 = vld [vmem:[%s1861_s1] sm:$0xff]  }
  0x41   : > { %1120 = vmatprep.subr.bf16.mxu0 %v1251_v27  ;;  %1142 = vmatprep.subr.bf16.mxu1 %v1251_v27 }
  0x42   : > { %1121 = vmatpush3.bf16.msra.mxu0 %v1251_v27  ;;  %1145 = vmatpush3.bf16.msra.mxu1 %v1251_v27 }
  0x43   : > { %542 = vrot.lane.b32.xlu1 %v1582_v37, %s1354_s27  ;;  %1122 = vmatprep.subr.bf16.mxu0 %v1252_v55 }
  0x44   : > { %534 = vrot.lane.b32.xlu0 %v445_v40, %s1354_s27  ;;  %1143 = vmatprep.subr.bf16.mxu1 %v1252_v55 }
  0x46   : > { %1123 = vmatpush3.bf16.msra.mxu0 %v1252_v55  ;;  %1146 = vmatpush3.bf16.msra.mxu1 %v1252_v55 }
  0x47   : > { %561 = vrot.lane.b32.xlu1 %v1507_v39, %s1355_s28  ;;  %1148 = vmatprep.subr.msk.bf16.mxu0 %vm799_vm2, %v1253_v62 }
  0x48   : > { %553 = vrot.lane.b32.xlu0 %v1514_v46, %s1355_s28  ;;  %1149 = vmatprep.subr.msk.bf16.mxu1 %vm799_vm2, %v1253_v62 }
  0x4a   : > { %1125 = vmatpush3.bf16.msra.mxu0 %v801_v3  ;;  %1147 = vmatpush3.bf16.msra.mxu1 %v801_v3 }
  0x4b   : > { %563 = vrot.lane.b32.xlu1 %v1585_v38, %s1355_s28 }
  0x4c   : > { %555 = vrot.lane.b32.xlu0 %v1591_v41, %s1355_s28 }
  0x4f   : > { %592 = vrot.lane.b32.xlu1 %v1555_v18, %s1356_s7 }
  0x50   : > { %584 = vrot.lane.b32.xlu0 %v1562_v26, %s1356_s7 }
  0x53   : > { %594 = vrot.lane.b32.xlu1 %v419_v63, %s1356_s7 }
  0x54   : > { %586 = vrot.lane.b32.xlu0 %v371_v5, %s1356_s7 }
  0x57   : > { %611 = vrot.lane.b32.xlu1 %v1582_v37, %s1357_s10 }
  0x58   : > { %603 = vrot.lane.b32.xlu0 %v445_v40, %s1357_s10 }
  0x5b   : > { %432 = vrot.lane.b32.xlu1 %v1555_v18, %s1352_s21 }
  0x5c   : > { %424 = vrot.lane.b32.xlu0 %v1562_v26, %s1352_s21 }
  0x5f   : > { %613 = vrot.lane.b32.xlu1 %v460_v10, %s1357_s10 }
  0x60   : > { %605 = vrot.lane.b32.xlu0 %v448_v11, %s1357_s10 }
  0x63   : > { %434 = vrot.lane.b32.xlu1 %v419_v63, %s1352_s21 }
  0x64   : > { %426 = vrot.lane.b32.xlu0 %v371_v5, %s1352_s21  ;;  %s1358_s21 = smov [#allocation2]  }
  0x67   : > { %473 = vrot.lane.b32.xlu1 %v1582_v37, %s1351_s20 }
  0x68   : > { %465 = vrot.lane.b32.xlu0 %v445_v40, %s1351_s20 }
  0x6b   : > { %475 = vrot.lane.b32.xlu1 %v460_v10, %s1351_s20 }
  0x6c   : > { %467 = vrot.lane.b32.xlu0 %v448_v11, %s1351_s20 }
  0x6f   : > { %494 = vrot.lane.b32.xlu1 %v1585_v38, %s1350_s11 }
  0x70   : > { %486 = vrot.lane.b32.xlu0 %v1591_v41, %s1350_s11 }
  0x73   : > { %496 = vrot.lane.b32.xlu1 %v1532_v57, %s1350_s11 }
  0x74   : > { %488 = vrot.lane.b32.xlu0 %v1470_v2, %s1350_s11  ;;  %s208_s11 = sand.u32 1, %s1324_s13  }
  0x75   : > { %s1807_s9 = scalar_lea.sflag [#allocation3], %s208_s11 }
  0x77   : > { %525 = vrot.lane.b32.xlu1 %v419_v63, %s1353_s24 }
  0x78   : > { %517 = vrot.lane.b32.xlu0 %v371_v5, %s1353_s24 }
  0x7b   : > { %527 = vrot.lane.b32.xlu1 %v1565_v28, %s1353_s24 }
  0x7c   : > { %519 = vrot.lane.b32.xlu0 %v1525_v52, %s1353_s24  ;;  %s1258_s24 = sshll.u32 %s1358_s21, 4  ;;  %s1259_s24 = int_to_ptr.vmem [resolvable:$false] %s1258_s24 }
  0x7f   : > { %544 = vrot.lane.b32.xlu1 %v460_v10, %s1354_s27 }
  0x80   : > { %536 = vrot.lane.b32.xlu0 %v448_v11, %s1354_s27 }
  0x83   : > { %546 = vrot.lane.b32.xlu1 %v1559_v21, %s1354_s27 }
  0x84   : > { %538 = vrot.lane.b32.xlu0 %v1483_v12, %s1354_s27  ;;  %s1065_s27 = sshll.u32 %s208_s11, 7 }
  0x87   : > { %565 = vrot.lane.b32.xlu1 %v1532_v57, %s1355_s28 }
  0x88   : > { %557 = vrot.lane.b32.xlu0 %v1470_v2, %s1355_s28 }
  0x8b   : > { %567 = vrot.lane.b32.xlu1 %v1540_v61, %s1355_s28 }
  0x8c   : > { %559 = vrot.lane.b32.xlu0 %v1460_v0, %s1355_s28  ;;  %s1777_s28 = scalar_lea.vmem [#allocation2], %s1065_s27  ;;  %s1260_s27 = scalar_lea.vmem %s1259_s24, 4096 }
  0x8d   : > { %s949_s16 = sshll.u32 %s1777_s28, 4  ;;  %s1801_s16 = int_to_ptr.vmem [resolvable:$true] %s949_s16 }
  0x8e   : > { %p1261_p2 = scmp.lt.s32.totalorder %s1801_s16, %s1259_s24 }
  0x8f   : > { %596 = vrot.lane.b32.xlu1 %v1565_v28, %s1356_s7 }
  0x90   : > { %588 = vrot.lane.b32.xlu0 %v1525_v52, %s1356_s7 }
  0x91   : > { %v491_v13 = vpop.permute.xlu1 %490  ;;  %v483_v14 = vpop.permute.xlu0 %482 }
  0x93   : > { %598 = vrot.lane.b32.xlu1 %v1576_v34, %s1356_s7 }
  0x94   : > { %590 = vrot.lane.b32.xlu0 %v1519_v48, %s1356_s7 }
  0x95   : > { %v470_v57 = vpop.permute.xlu1 %469 }
  0x96   : > { %v462_v15 = vpop.permute.xlu0 %461 }
  0x97   : > { %615 = vrot.lane.b32.xlu1 %v1559_v21, %s1357_s10 }
  0x98   : > { %607 = vrot.lane.b32.xlu0 %v1483_v12, %s1357_s10 }
  0x99   : > { %v472_v61 = vpop.permute.xlu1 %471 }
  0x9a   : > { %v464_v16 = vpop.permute.xlu0 %463 }
  0x9b   : > { %617 = vrot.lane.b32.xlu1 %v1570_v31, %s1357_s10 }
  0x9c   : > { %609 = vrot.lane.b32.xlu0 %v1495_v23, %s1357_s10  ;;  %s1254_s10 = scalar_lea.vmem %s1801_s16, 2048 }
  0x9d   : > { %v423_v52 = vpop.permute.xlu1 %422  ;;  %p1255_p13 = scmp.ne.s32.totalorder %s1801_s16, %s1254_s10  ;;  %p1262_p4 = scmp.lt.s32.totalorder %s1260_s27, %s1254_s10 }
  0x9e   : > { %v421_v17 = vpop.permute.xlu0 %420  ;;  %v623_v56 = vsel %vm619_vm3, %v1463_v1, %v423_v52 }
  0x9f   : > { %v621_v34 = vsel %vm619_vm3, %v1474_v4, %v421_v17  ;;  %v640_v3 = vsel %vm636_vm4, %v623_v56, %v464_v16  ;;  %p1256_p0 = pnand %p1255_p13, %p1431_p3  ;;  %p1263_p5 = por %p1262_p4, %p1261_p2 }
  0xa0   : > { %v638_v40 = vsel %vm636_vm4, %v621_v34, %v462_v15 }
  0xa1   : > { %v431_v18 = vpop.permute.xlu1 %430  ;;  %v655_v44 = vsel %vm653_vm6, %v638_v40, %v483_v14  ;;  %p1257_p1 = pneg %p1256_p0 }
  0xa2   : > { %v429_v48 = vpop.permute.xlu0 %428  ;;  %v631_v49 = vsel %vm619_vm3, %v1460_v0, %v431_v18 }
  0xa3   : > { %v629_v23 = vsel %vm619_vm3, %v1470_v2, %v429_v48  ;;  %v648_v60 = vsel %vm636_vm4, %v631_v49, %v472_v61  ;;  %p1264_p6 = pnand %p1263_p5, %p1257_p1 }
  0xa4   : > { %v646_v36 = vsel %vm636_vm4, %v629_v23, %v470_v57 }
  0xa5   : > { %v493_v19 = vpop.permute.xlu1 %492  ;;  %v663_v42 = vsel %vm653_vm6, %v646_v36, %v491_v13 }
  0xa6   : > { %v485_v20 = vpop.permute.xlu0 %484  ;;  %v665_v62 = vsel %vm653_vm6, %v648_v60, %v493_v19 }
  0xa7   : > { %v657_v1 = vsel %vm653_vm6, %v640_v3, %v485_v20 }
  0xa9   : > { %v522_v22 = vpop.permute.xlu1 %521 }
  0xaa   : > { %v514_v24 = vpop.permute.xlu0 %513  ;;  %v680_v2 = vsel %vm670_vm5, %v663_v42, %v522_v22 }
  0xab   : > { %v672_v27 = vsel %vm670_vm5, %v655_v44, %v514_v24 }
  0xad   : > { %v524_v21 = vpop.permute.xlu1 %523 }
  0xae   : > { %v516_v25 = vpop.permute.xlu0 %515  ;;  %v682_v5 = vsel %vm670_vm5, %v665_v62, %v524_v21 }
  0xaf   : > { %v674_v8 = vsel %vm670_vm5, %v657_v1, %v516_v25 }
  0xb1   : > { %v541_v26 = vpop.permute.xlu1 %540 }
  0xb2   : > { %v533_v12 = vpop.permute.xlu0 %532  ;;  %v697_v4 = vsel %vm687_vm7, %v680_v2, %v541_v26 }
  0xb3   : > { %v689_v50 = vsel %vm687_vm7, %v672_v27, %v533_v12 }
  0xb5   : > { %v543_v28 = vpop.permute.xlu1 %542 }
  0xb6   : > { %v535_v29 = vpop.permute.xlu0 %534  ;;  %v699_v6 = vsel %vm687_vm7, %v682_v5, %v543_v28 }
  0xb7   : > { %v691_v10 = vsel %vm687_vm7, %v674_v8, %v535_v29 }
  0xb9   : > { %v562_v30 = vpop.permute.xlu1 %561 }
  0xba   : > { %v554_v32 = vpop.permute.xlu0 %553  ;;  %v714_v47 = vsel %vm704_vm8, %v697_v4, %v562_v30 }
  0xbb   : > { %v706_v54 = vsel %vm704_vm8, %v689_v50, %v554_v32 }
  0xbd   : > { %v564_v31 = vpop.permute.xlu1 %563 }
  0xbe   : > { %v556_v33 = vpop.permute.xlu0 %555  ;;  %v716_v9 = vsel %vm704_vm8, %v699_v6, %v564_v31 }
  0xbf   : > { %v708_v14 = vsel %vm704_vm8, %v691_v10, %v556_v33 }
  0xc1   : > { %v593_v35 = vpop.permute.xlu1 %592 }
  0xc2   : > { %v585_v37 = vpop.permute.xlu0 %584  ;;  %v731_v51 = vsel %vm721_vm9, %v714_v47, %v593_v35 }
  0xc3   : > { %v723_v58 = vsel %vm721_vm9, %v706_v54, %v585_v37 }
  0xc5   : > { %v595_v43 = vpop.permute.xlu1 %594 }
  0xc6   : > { %v587_v45 = vpop.permute.xlu0 %586  ;;  %v733_v11 = vsel %vm721_vm9, %v716_v9, %v595_v43 }
  0xc7   : > { %v725_v15 = vsel %vm721_vm9, %v708_v14, %v587_v45 }
  0xc9   : > { %v612_v53 = vpop.permute.xlu1 %611 }
  0xca   : > { %v748_v55 = vsel %vm738_vm10, %v731_v51, %v612_v53  ;;  %v604_v59 = vpop.permute.xlu0 %603 }
  0xcb   : > { %1134 = vmatprep.mubr.msk.bf16.mxu1 %vm782_vm11, %v748_v55  ;;  %v740_v0 = vsel %vm738_vm10, %v723_v58, %v604_v59 }
  0xcc   : > { %1126 = vmatprep.mubr.msk.bf16.mxu0 %vm782_vm11, %v740_v0 }
  0xcd   : > { %v433_v63 = vpop.permute.xlu1 %432 }
  0xce   : > { %v425_v7 = vpop.permute.xlu0 %424  ;;  %v633_v40 = vsel %vm619_vm3, %v1507_v39, %v433_v63 }
  0xcf   : > { %v625_v2 = vsel %vm619_vm3, %v1514_v46, %v425_v7 }
  0xd1   : > { %v614_v13 = vpop.permute.xlu1 %613 }
  0xd2   : > { %v750_v57 = vsel %vm738_vm10, %v733_v11, %v614_v13  ;;  %v606_v61 = vpop.permute.xlu0 %605 }
  0xd3   : > { %1135 = vmatmul.mubr.msk.bf16.vlgmr.msra.gmra.mrb[0].mxu1 %vm782_vm11, %v750_v57  ;;  %v742_v16 = vsel %vm738_vm10, %v725_v15, %v606_v61  ;;  %v1090_v61 = vld [vmem:[%s1862_s2] ss:$0 sm:$0xff] }
  0xd4   : > { %1127 = vmatmul.mubr.msk.bf16.vlgmr.msra.gmra.mrb[0].mxu0 %vm782_vm11, %v742_v16 }
  0xd5   : > { %v435_v52 = vpop.permute.xlu1 %434 }
  0xd6   : > { %v427_v17 = vpop.permute.xlu0 %426  ;;  %v635_v47 = vsel %vm619_vm3, %v1585_v38, %v435_v52 }
  0xd7   : > { %v627_v54 = vsel %vm619_vm3, %v1591_v41, %v427_v17 }
  0xd9   : > { %v474_v18 = vpop.permute.xlu1 %473 }
  0xda   : > { %v466_v48 = vpop.permute.xlu0 %465  ;;  %v650_v43 = vsel %vm636_vm4, %v633_v40, %v474_v18 }
  0xdb   : > { %v642_v45 = vsel %vm636_vm4, %v625_v2, %v466_v48 }
  0xdd   : > { %v476_v19 = vpop.permute.xlu1 %475 }
  0xde   : > { %v468_v20 = vpop.permute.xlu0 %467  ;;  %v652_v51 = vsel %vm636_vm4, %v635_v47, %v476_v19 }
  0xdf   : > { %v644_v59 = vsel %vm636_vm4, %v627_v54, %v468_v20 }
  0xe1   : > { %v495_v22 = vpop.permute.xlu1 %494 }
  0xe2   : > { %v487_v24 = vpop.permute.xlu0 %486  ;;  %v667_v44 = vsel %vm653_vm6, %v650_v43, %v495_v22 }
  0xe3   : > { %v659_v49 = vsel %vm653_vm6, %v642_v45, %v487_v24 }
  0xe5   : > { %v497_v21 = vpop.permute.xlu1 %496 }
  0xe6   : > { %v489_v25 = vpop.permute.xlu0 %488  ;;  %v669_v55 = vsel %vm653_vm6, %v652_v51, %v497_v21 }
  0xe7   : > { %v661_v63 = vsel %vm653_vm6, %v644_v59, %v489_v25 }
  0xe9   : > { %v526_v26 = vpop.permute.xlu1 %525 }
  0xea   : > { %v518_v12 = vpop.permute.xlu0 %517  ;;  %v684_v27 = vsel %vm670_vm5, %v667_v44, %v526_v26 }
  0xeb   : > { %v676_v53 = vsel %vm670_vm5, %v659_v49, %v518_v12 }
  0xed   : > { %v528_v28 = vpop.permute.xlu1 %527 }
  0xee   : > { %v520_v29 = vpop.permute.xlu0 %519  ;;  %v686_v60 = vsel %vm670_vm5, %v669_v55, %v528_v28 }
  0xef   : > { %v678_v1 = vsel %vm670_vm5, %v661_v63, %v520_v29 }
  0xf1   : > { %v545_v30 = vpop.permute.xlu1 %544 }
  0xf2   : > { %v537_v32 = vpop.permute.xlu0 %536  ;;  %v701_v39 = vsel %vm687_vm7, %v684_v27, %v545_v30 }
  0xf3   : > { %v693_v56 = vsel %vm687_vm7, %v676_v53, %v537_v32 }
  0xf5   : > { %v547_v31 = vpop.permute.xlu1 %546 }
  0xf6   : > { %v539_v23 = vpop.permute.xlu0 %538  ;;  %v703_v3 = vsel %vm687_vm7, %v686_v60, %v547_v31 }
  0xf7   : > { %v695_v8 = vsel %vm687_vm7, %v678_v1, %v539_v23 }
  0xf9   : > { %v566_v33 = vpop.permute.xlu1 %565 }
  0xfa   : > { %v558_v34 = vpop.permute.xlu0 %557  ;;  %v718_v46 = vsel %vm704_vm8, %v701_v39, %v566_v33 }
  0xfb   : > { %v710_v0 = vsel %vm704_vm8, %v693_v56, %v558_v34 }
  0xfd   : > { %v568_v35 = vpop.permute.xlu1 %567 }
  0xfe   : > { %v560_v36 = vpop.permute.xlu0 %559  ;;  %v720_v6 = vsel %vm704_vm8, %v703_v3, %v568_v35 }
  0xff   : > { %v712_v11 = vsel %vm704_vm8, %v695_v8, %v560_v36 }
 0x101   : > { %v597_v37 = vpop.permute.xlu1 %596 }
 0x102   : > { %v589_v42 = vpop.permute.xlu0 %588  ;;  %v735_v38 = vsel %vm721_vm9, %v718_v46, %v597_v37 }
 0x103   : > { %v727_v41 = vsel %vm721_vm9, %v710_v0, %v589_v42 }
 0x105   : > { %v599_v4 = vpop.permute.xlu1 %598 }
 0x106   : > { %v591_v50 = vpop.permute.xlu0 %590  ;;  %v737_v9 = vsel %vm721_vm9, %v720_v6, %v599_v4 }
 0x107   : > { %v729_v14 = vsel %vm721_vm9, %v712_v11, %v591_v50 }
 0x109   : > { %v616_v58 = vpop.permute.xlu1 %615 }
 0x10a   : > { %v752_v62 = vsel %vm738_vm10, %v735_v38, %v616_v58  ;;  %v608_v5 = vpop.permute.xlu0 %607 }
 0x10b   : > { %1138 = vmatprep.mubr.msk.bf16.mxu1 %vm782_vm11, %v752_v62  ;;  %v744_v7 = vsel %vm738_vm10, %v727_v41, %v608_v5 }
 0x10c   : > { %1130 = vmatprep.mubr.msk.bf16.mxu0 %vm782_vm11, %v744_v7 }
 0x10d   : > { %v618_v10 = vpop.permute.xlu1 %617 }
 0x10e   : > { %v754_v13 = vsel %vm738_vm10, %v737_v9, %v618_v10  ;;  %v610_v57 = vpop.permute.xlu0 %609 }
 0x10f   : > { %1139 = vmatmul.mubr.msk.bf16.gmra.mrb[4].mxu1 %vm782_vm11, %v754_v13  ;;  %v746_v15 = vsel %vm738_vm10, %v729_v14, %v610_v57 }
 0x110   : > { %1131 = vmatmul.mubr.msk.bf16.gmra.mrb[4].mxu0 %vm782_vm11, %v746_v15 }
 0x1a6   : > { %v1136_v16 = vpop.f32.mrb[0].mxu1 }
 0x1a7   : > { %v878_v52 = vadd.f32 %v1136_v16, %v1090_v61  ;;  %v869_v17 = vpop.f32.mrb[1].mxu1  ;;  %v1128_v18 = vpop.f32.mrb[0].mxu0 }
 0x1a8   : > { %v870_v48 = vadd.f32 %v1090_v61, %v869_v17  ;;  %v1137_v19 = vpop.f32.mrb[2].mxu1  ;;  %v846_v20 = vadd.f32 %v1128_v18, %v1090_v61  ;;  %v837_v24 = vpop.f32.mrb[1].mxu0 }
 0x1a9   : > { %v910_v22 = vmax.f32 %v878_v52, 0.0  ;;  %v881_v21 = vadd.f32 %v1137_v19, %v1090_v61  ;;  %v872_v25 = vpop.f32.mrb[3].mxu1  ;;  %v838_v26 = vadd.f32 %v1090_v61, %v837_v24  ;;  %v1129_v28 = vpop.f32.mrb[2].mxu0 }
 0x1aa   : > { %v908_v12 = vmax.f32 %v870_v48, 0.0  ;;  %v873_v29 = vadd.f32 %v1090_v61, %v872_v25  ;;  %v902_v30 = vmax.f32 %v846_v20, 0.0  ;;  %v849_v32 = vadd.f32 %v1129_v28, %v1090_v61  ;;  %v840_v23 = vpop.f32.mrb[3].mxu0 }
 0x1ab   : > { %926 = vst [vmem:[%s1777_s28 + $0x50] sm:$0xff] %v910_v22  ;;  %v911_v31 = vmax.f32 %v881_v21, 0.0  ;;  %v900_v33 = vmax.f32 %v838_v26, 0.0  ;;  %v841_v34 = vadd.f32 %v1090_v61, %v840_v23 }
 0x1ac   : > { %924 = vst [vmem:[%s1777_s28 + $0x40] sm:$0xff] %v908_v12  ;;  %v909_v35 = vmax.f32 %v873_v29, 0.0  ;;  %918 = vst [vmem:[%s1777_s28 + $0x10] sm:$0xff] %v902_v30  ;;  %v903_v36 = vmax.f32 %v849_v32, 0.0 }
 0x1ad   : > { %927 = vst [vmem:[%s1777_s28 + $0x58] sm:$0xff] %v911_v31  ;;  %916 = vst [vmem:[%s1777_s28] sm:$0xff] %v900_v33  ;;  %v901_v37 = vmax.f32 %v841_v34, 0.0 }
 0x1ae   : > { %925 = vst [vmem:[%s1777_s28 + $0x48] sm:$0xff] %v909_v35  ;;  %919 = vst [vmem:[%s1777_s28 + $0x18] sm:$0xff] %v903_v36 }
 0x1af   : > { %917 = vst [vmem:[%s1777_s28 + $0x8] sm:$0xff] %v901_v37 }
 0x1e2   : > { %v1140_v40 = vpop.f32.mrb[4].mxu1 }
 0x1e3   : > { %v894_v42 = vadd.f32 %v1140_v40, %v1090_v61  ;;  %v885_v43 = vpop.f32.mrb[5].mxu1  ;;  %v1132_v2 = vpop.f32.mrb[4].mxu0 }
 0x1e4   : > { %v886_v44 = vadd.f32 %v1090_v61, %v885_v43  ;;  %v1141_v4 = vpop.f32.mrb[6].mxu1  ;;  %v862_v45 = vadd.f32 %v1132_v2, %v1090_v61  ;;  %v853_v47 = vpop.f32.mrb[5].mxu0 }
 0x1e5   : > { %v914_v27 = vmax.f32 %v894_v42, 0.0  ;;  %v897_v49 = vadd.f32 %v1141_v4, %v1090_v61  ;;  %v888_v39 = vpop.f32.mrb[7].mxu1  ;;  %v854_v50 = vadd.f32 %v1090_v61, %v853_v47  ;;  %v1133_v53 = vpop.f32.mrb[6].mxu0 }
 0x1e6   : > { %v912_v51 = vmax.f32 %v886_v44, 0.0  ;;  %v889_v46 = vadd.f32 %v1090_v61, %v888_v39  ;;  %v906_v54 = vmax.f32 %v862_v45, 0.0  ;;  %v865_v55 = vadd.f32 %v1133_v53, %v1090_v61  ;;  %v856_v38 = vpop.f32.mrb[7].mxu0 }
 0x1e7   : > { %930 = vst [vmem:[%s1777_s28 + $0x70] sm:$0xff] %v914_v27  ;;  %v915_v56 = vmax.f32 %v897_v49, 0.0  ;;  %v904_v58 = vmax.f32 %v854_v50, 0.0  ;;  %v857_v59 = vadd.f32 %v1090_v61, %v856_v38 }
 0x1e8   : > { %928 = vst [vmem:[%s1777_s28 + $0x60] sm:$0xff] %v912_v51  ;;  %v913_v60 = vmax.f32 %v889_v46, 0.0  ;;  %922 = vst [vmem:[%s1777_s28 + $0x30] sm:$0xff] %v906_v54  ;;  %v907_v0 = vmax.f32 %v865_v55, 0.0 }
 0x1e9   : > { %931 = vst [vmem:[%s1777_s28 + $0x78] sm:$0xff] %v915_v56  ;;  %920 = vst [vmem:[%s1777_s28 + $0x20] sm:$0xff] %v904_v58  ;;  %v905_v62 = vmax.f32 %v857_v59, 0.0 }
 0x1ea   : > { %929 = vst [vmem:[%s1777_s28 + $0x68] sm:$0xff] %v913_v60  ;;  %923 = vst [vmem:[%s1777_s28 + $0x38] sm:$0xff] %v907_v0 }
 0x1eb   : > { %921 = vst [vmem:[%s1777_s28 + $0x28] sm:$0xff] %v905_v62 }
 0x1ec   : > { %1267 = shalt.err (!%p1264_p6)
}
 0x1ed   : > { %s1268_s11 = scalar_lea.hbm %s1797_s8, 2048  ;;  %s1272_s4 = scalar_lea.hbm %s1863_s3, 8192 }
 0x1ee   : > { %p1269_p7 = scmp.ne.s32.totalorder %s1797_s8, %s1268_s11  ;;  %p1273_p11 = scmp.lt.u32.totalorder %s1797_s8, %s1863_s3 }
 0x1ef   : > { %p1274_p12 = scmp.lt.u32.totalorder %s1272_s4, %s1268_s11  ;;  %p1276_p0 = scmp.lt.u32.totalorder %s1268_s11, %s1797_s8 }
 0x1f0   : > { %p1270_p9 = pnand %p1269_p7, %p1431_p3 }
 0x1f1   : > { %p1275_p13 = por %p1274_p12, %p1273_p11 }
 0x1f2   : > { %p1271_p10 = pneg %p1270_p9 }
 0x1f3   : > { %p1277_p1 = por %p1276_p0, %p1275_p13 }
 0x1f5   : > { %p1278_p2 = pnand %p1277_p1, %p1271_p10 }
 0x1f7   : > { %1281 = shalt.err (!%p1278_p2)
}
 0x1f8   : > { %s1359_s6 = smov 128  }
 0x1f9   : > { %1151 = dma.vmem_to_hbm [thread:$0]  (%p1431_p3), %s1801_s16, 2048, %s1797_s8, %s1807_s9, %s1359_s6, %s1359_s6, %s1351_s20  }
 0x1fa PF: > { %p1157_p4 = scmp.ge.s32.totalorder %s1348_s19, 2  ;;  %s964_s7 = sand.u32 1, %s1320_s12  }
 0x1fb   : > { %s965_s10 = scalar_lea.sflag [#allocation3], %s964_s7 }
 0x1fc   : > { %p1154_p5 = pnand %p1157_p4, %p1440_p8 }
 0x1fe   : > { %1315 = dma.done.wait (!%p1154_p5), %s965_s10, 2048  }
 0x1ff   : > { %1317 = vsyncadd (!%p1154_p5), %s965_s10, 4294965248  ;;  %s16_s19 = sadd.s32 1, %s1348_s19   ;;  %s1866_s12 = smov %s1324_s13 }
 0x200   : > { %p13_p6 = scmp.ge.s32.totalorder %s16_s19, 6   ;;  %s1867_s13 = smov %s1328_s14 }
 0x201   : > { %s1868_s14 = smov %s1449_s30  ;;  %s1869_s15 = smov %s1340_s17 }
 0x202   : > { %s1870_s16 = smov %s1344_s18  ;;  %s1871_s17 = smov %s1874_s22 }
 0x203   : > { %s1872_s18 = smov %s1878_s23  ;;  %15 = sbr.rel (!%p13_p6) target bundleno = 5 (0x5), region = 74 }
 0x20a   :  { %970 = vsyncpa [#allocation3], 1 }
 0x20b   :  { %972 = vsyncpa [#allocation3 + $0x1], 1 }

</bundles_post_ra>
